<compile_context>
chip_gen: v6e
topology: v6e:2x2x1
jax: 0.10.0
libtpu: 0.0.40
codegen_flags: <defaults>
</compile_context>

<pallas_src>
import functools

import jax
import jax.numpy as jnp
from jax import lax
from jax.experimental import pallas as pl
from jax.experimental.pallas import tpu as pltpu


def _crf_logz_kernel(feats_ref, len_ref, expT_ref, cm_ref, end_ref, out_ref,
                     alpha_ref):
    """Forward algorithm (log partition) for a linear-chain CRF.

    Layout (batch on lanes, tags on sublanes):
      feats_ref : (Tt, Tg, LB) stream dtype  (start scores folded into t==0)
      len_ref   : (1, LB)      int32         per-column sequence length
      expT_ref  : (Tg, Tg)     f32           exp(trans - colmax).T  [cur, prev]
      cm_ref    : (Tg, 1)      f32           colmax(trans) over prev, per cur
      end_ref   : (Tg, 1)      f32
      out_ref   : (1, LB)      f32           logZ per batch column
      alpha_ref : (Tg, LB)     f32 scratch   carried across time chunks
    """
    Tt, Tg, LB = feats_ref.shape
    t_chunk = pl.program_id(1)
    last_chunk = pl.num_programs(1) - 1

    expT_t = expT_ref[...]                                   # (cur, prev) f32
    lens = len_ref[...]                                      # (1, LB) int32
    # Hoist the lane broadcast of the transition column-max out of the loop.
    cm_b = jnp.broadcast_to(cm_ref[...], (Tg, LB))           # (Tg, LB)
    tiny = jnp.float32(1.1754944e-38)

    @pl.when(t_chunk == 0)
    def _():
        # t = 0: alpha = start + feats[0]  (start already folded in wrapper)
        alpha_ref[...] = feats_ref[0].astype(jnp.float32)

    t0 = t_chunk * Tt

    def step(i, alpha):
        g = t0 + i                                           # global time index
        # logsumexp over `prev` via a stabilized exp-matmul on the MXU:
        mx = jnp.max(alpha, axis=0, keepdims=True)           # (1, LB)   XLU
        p = jnp.exp(alpha - mx)                              # (Tg, LB)  EUP
        s = jnp.dot(expT_t, p,
                    preferred_element_type=jnp.float32)      # (Tg, LB)  MXU
        emit = feats_ref[i].astype(jnp.float32)              # (Tg, LB)
        new_alpha = jnp.log(jnp.maximum(s, tiny)) + (mx + cm_b) + emit
        # Step g is valid iff token g exists (g < len); g == 0 is the init.
        valid = jnp.logical_and(g >= 1, g < lens)            # (1, LB)
        return jnp.where(valid, new_alpha, alpha)

    alpha = lax.fori_loop(0, Tt, step, alpha_ref[...], unroll=min(Tt, 4))
    alpha_ref[...] = alpha

    @pl.when(t_chunk == last_chunk)
    def _():
        a = alpha + end_ref[...]                             # (Tg, LB)
        mx = jnp.max(a, axis=0, keepdims=True)               # (1, LB)
        out_ref[...] = jnp.log(
            jnp.sum(jnp.exp(a - mx), axis=0, keepdims=True)) + mx


def _vmem_limit_bytes(feats_block_bytes, Tg, LB):
    small = 4 * (Tg * Tg + 2 * Tg + 2 * LB)                  # consts + lens + out
    need = 2 * (feats_block_bytes + small) + 4 * Tg * LB + (2 << 20)
    try:
        cap = pltpu.get_tpu_info().vmem_capacity_bytes       # 64 MiB on v7x
    except Exception:
        cap = 64 << 20
    hi = max(24 << 20, int(cap * 0.7))
    return int(min(max(need, 16 << 20), hi))


def crf_neg_log_likelihood(feats, tags, masks, trans, start, end, *,
                           lane_block=128, time_block=None,
                           stream_dtype=jnp.bfloat16):
    """neg log likelihood = logZ(feats, masks) - gold_score(feats, tags, masks).

    Assumes masks are a contiguous prefix of 1s (same assumption as fastNLP).
    Zero-length rows reproduce the reference's degenerate end[tags[b, -1]].
    """
    B, T, Tg = feats.shape
    f32 = jnp.float32
    feats = feats.astype(f32)
    trans = trans.astype(f32)
    start = start.astype(f32)
    end = end.astype(f32)
    masks_f = masks.astype(f32)
    lengths = jnp.sum(masks.astype(jnp.int32), axis=1)       # (B,)

    # ---------------- normalizer (logZ) via Pallas kernel ----------------
    LB = lane_block
    Bp = pl.cdiv(B, LB) * LB

    itemsize = jnp.dtype(stream_dtype).itemsize
    if time_block is None:
        # keep the double-buffered feats chunk under ~8 MiB
        max_tt = max(8, (8 << 20) // (2 * itemsize * Tg * LB))
        time_block = int(min(T, max_tt))
    Tt = int(time_block)
    Tp = pl.cdiv(T, Tt) * Tt

    # Relayout (B,T,Tg) -> (Tp,Tg,Bp); fold start scores into t == 0.
    # TODO(synk): this transpose+pad is a full HBM round-trip done by XLA;
    # produce feats in (T, Tg, B) layout upstream to avoid it.
    feats_t = jnp.transpose(feats, (1, 2, 0))                # (T, Tg, B)
    feats_t = feats_t.at[0].add(start[:, None])
    feats_t = jnp.pad(feats_t, ((0, Tp - T), (0, 0), (0, Bp - B)))
    feats_t = feats_t.astype(stream_dtype)

    lens_p = jnp.pad(lengths, (0, Bp - B)).reshape(1, Bp).astype(jnp.int32)

    cm = jnp.max(trans, axis=0)                              # (Tg,) colmax over prev
    expT_t = jnp.exp(trans - cm[None, :]).T                  # (cur, prev), stabilized
    cm_col = cm.reshape(Tg, 1)
    end_col = end.reshape(Tg, 1)

    n_bt = Bp // LB
    n_tc = Tp // Tt
    grid = (n_bt, n_tc)

    cost = pl.CostEstimate(
        flops=int(n_bt * Tp * LB * (2 * Tg * Tg + 8 * Tg)),
        transcendentals=int(n_bt * Tp * LB * 2 * Tg),
        bytes_accessed=int(feats_t.size * itemsize + lens_p.size * 4
                           + (Tg * Tg + 2 * Tg) * 4 + 4 * Bp),
    )

    logz = pl.pallas_call(
        _crf_logz_kernel,
        out_shape=jax.ShapeDtypeStruct((1, Bp), f32),
        grid_spec=pltpu.PrefetchScalarGridSpec(
            num_scalar_prefetch=0,
            grid=grid,
            in_specs=[
                pl.BlockSpec((Tt, Tg, LB), lambda b, t: (t, 0, b)),
                pl.BlockSpec((1, LB), lambda b, t: (0, b)),
                pl.BlockSpec((Tg, Tg), lambda b, t: (0, 0)),
                pl.BlockSpec((Tg, 1), lambda b, t: (0, 0)),
                pl.BlockSpec((Tg, 1), lambda b, t: (0, 0)),
            ],
            out_specs=pl.BlockSpec((1, LB), lambda b, t: (0, b)),
            scratch_shapes=[pltpu.VMEM((Tg, LB), f32)],
        ),
        compiler_params=pltpu.CompilerParams(
            dimension_semantics=("parallel", "arbitrary"),
            vmem_limit_bytes=_vmem_limit_bytes(Tt * Tg * LB * itemsize, Tg, LB),
        ),
        cost_estimate=cost,
    )(feats_t, lens_p, expT_t, cm_col, end_col)
    logz = logz[0, :B]

    # ------------- gold path score: O(B*T) gathers in plain JAX -------------
    bidx = jnp.arange(B)
    emit = jnp.take_along_axis(feats, tags[..., None], axis=2)[..., 0]   # (B, T)
    gold = start[tags[:, 0]] + emit[:, 0]
    if T > 1:
        trans_sc = trans[tags[:, :-1], tags[:, 1:]]                      # (B, T-1)
        gold = gold + jnp.sum((trans_sc + emit[:, 1:]) * masks_f[:, 1:], axis=1)
    last_idx = jnp.sum(masks.astype(jnp.int32), axis=1) - 1
    gold = gold + end[tags[bidx, last_idx]]

    return logz - gold


# ----------------------------- pure-JAX reference -----------------------------
def crf_nll_reference(feats, tags, masks, trans, start, end):
    B, T, Tg = feats.shape
    m = masks.astype(jnp.float32)
    alpha = start[None, :] + feats[:, 0]
    for i in range(1, T):
        scores = alpha[:, :, None] + trans[None, :, :] + feats[:, i][:, None, :]
        new_alpha = jax.scipy.special.logsumexp(scores, axis=1)
        mi = m[:, i][:, None]
        alpha = new_alpha * mi + alpha * (1.0 - mi)
    alpha = alpha + end[None, :]
    norm = jax.scipy.special.logsumexp(alpha, axis=1)

    bidx = jnp.arange(B)
    gold = start[tags[:, 0]] + feats[bidx, 0, tags[:, 0]]
    for i in range(1, T):
        ts = trans[tags[:, i - 1], tags[:, i]]
        es = feats[bidx, i, tags[:, i]]
        mi = m[:, i]
        gold = (gold + ts + es) * mi + gold * (1.0 - mi)
    last_idx = jnp.sum(masks.astype(jnp.int32), axis=1) - 1
    gold = gold + end[tags[bidx, last_idx]]
    return norm - gold


if __name__ == "__main__":
    B, T, Tg = 4, 8, 8
    key = jax.random.PRNGKey(0)
    k1, k2, k3, k4, k5 = jax.random.split(key, 5)

    # deterministic parameter init mirroring the module's reset_parameter():
    #   transition_m: xavier_normal_, start/end scores: standard normal
    trans = jax.random.normal(k1, (Tg, Tg), jnp.float32) * jnp.sqrt(2.0 / (Tg + Tg))
    start = jax.random.normal(k2, (Tg,), jnp.float32)
    end = jax.random.normal(k3, (Tg,), jnp.float32)

    feats = jax.random.normal(k4, (B, T, Tg), jnp.float32)
    tags = jax.random.randint(k5, (B, T), 0, Tg, dtype=jnp.int32)
    lengths = jnp.array([T, 5, 3, 1], jnp.int32)
    masks = (jnp.arange(T)[None, :] < lengths[:, None]).astype(jnp.uint8)

    ref = crf_nll_reference(feats, tags, masks, trans, start, end)

    # Tight-tolerance correctness gate: f32 streaming, small time chunks to
    # exercise the chunked grid + alpha scratch carry.
    fn32 = jax.jit(functools.partial(crf_neg_log_likelihood,
                                     stream_dtype=jnp.float32, time_block=4))
    out32 = jax.block_until_ready(fn32(feats, tags, masks, trans, start, end))
    assert out32.shape == (B,)
    assert jnp.allclose(out32, ref, atol=1e-3, rtol=1e-3), (out32, ref)

    # Default (bf16-streamed feats) fast path; looser tolerance reflects the
    # bf16 quantization of the emission scores only.
    fn16 = jax.jit(crf_neg_log_likelihood)
    out16 = jax.block_until_ready(fn16(feats, tags, masks, trans, start, end))
    assert jnp.allclose(out16, ref, atol=1.5e-1, rtol=2e-2), (out16, ref)

    print("KERNEL_OK")

    # TODO(synk): viterbi_decode (host-side backtracking over argmax paths) is
    # not implemented as a Pallas kernel; only the forward (NLL) pass is.
</pallas_src>

<mosaic_0001>
module attributes {stable_mosaic.version = 11 : i64} {
  func.func @_crf_logz_kernel(%arg0: i32, %arg1: i32, %arg2: memref<4x8x128xf32, #tpu.memory_space<vmem>>, %arg3: memref<1x128xi32, #tpu.memory_space<vmem>>, %arg4: memref<8x8xf32, #tpu.memory_space<vmem>>, %arg5: memref<8x1xf32, #tpu.memory_space<vmem>>, %arg6: memref<8x1xf32, #tpu.memory_space<vmem>>, %arg7: memref<1x128xf32, #tpu.memory_space<vmem>>, %arg8: memref<8x128xf32, #tpu.memory_space<vmem>>) attributes {dimension_semantics = [#tpu.dimension_semantics<parallel>, #tpu.dimension_semantics<arbitrary>], iteration_bounds = array<i64: 1, 2>, scalar_prefetch = 0 : i64, scratch_operands = 1 : i64, tpu.core_type = #tpu.core_type<tc>, window_params = [{transform_indices = @transform_0, window_bounds = array<i64: 4, 8, 128>}, {transform_indices = @transform_1, window_bounds = array<i64: 1, 128>}, {pipeline_mode = #tpu.pipeline_mode<synchronous>, transform_indices = @transform_2, window_bounds = array<i64: 8, 8>}, {pipeline_mode = #tpu.pipeline_mode<synchronous>, transform_indices = @transform_3, window_bounds = array<i64: 8, 1>}, {pipeline_mode = #tpu.pipeline_mode<synchronous>, transform_indices = @transform_4, window_bounds = array<i64: 8, 1>}, {transform_indices = @transform_5, window_bounds = array<i64: 1, 128>}]} {
    %c0 = arith.constant 0 : index
    %c0_0 = arith.constant 0 : index
    %0 = vector.load %arg4[%c0, %c0_0] : memref<8x8xf32, #tpu.memory_space<vmem>>, vector<8x8xf32>
    %c0_1 = arith.constant 0 : index
    %c0_2 = arith.constant 0 : index
    %1 = vector.load %arg3[%c0_1, %c0_2] : memref<1x128xi32, #tpu.memory_space<vmem>>, vector<1x128xi32>
    %c0_3 = arith.constant 0 : index
    %c0_4 = arith.constant 0 : index
    %2 = vector.load %arg5[%c0_3, %c0_4] : memref<8x1xf32, #tpu.memory_space<vmem>>, vector<8x1xf32>
    %3 = vector.shape_cast %2 : vector<8x1xf32> to vector<8x1xf32>
    %4 = vector.broadcast %3 : vector<8x1xf32> to vector<8x128xf32>
    %c0_i32 = arith.constant 0 : i32
    %5 = arith.cmpi eq, %arg1, %c0_i32 : i32
    %6 = arith.extui %5 : i1 to i32
    %c0_i32_5 = arith.constant 0 : i32
    %7 = arith.cmpi ne, %6, %c0_i32_5 : i32
    scf.if %7 {
      %c0_34 = arith.constant 0 : index
      %c0_35 = arith.constant 0 : index
      %c0_36 = arith.constant 0 : index
      %114 = vector.load %arg2[%c0_34, %c0_35, %c0_36] : memref<4x8x128xf32, #tpu.memory_space<vmem>>, vector<1x8x128xf32>
      %115 = vector.shape_cast %114 : vector<1x8x128xf32> to vector<8x128xf32>
      %c0_37 = arith.constant 0 : index
      %c0_38 = arith.constant 0 : index
      %116 = vector.load %arg8[%c0_37, %c0_38] : memref<8x128xf32, #tpu.memory_space<vmem>>, vector<8x128xf32>
      tpu.vector_store %arg8[%c0_37, %c0_38], %115 {strides = array<i32>} : memref<8x128xf32, #tpu.memory_space<vmem>>, vector<8x128xf32>,
    } else {
    }
    %c4_i32 = arith.constant 4 : i32
    %8 = arith.muli %arg1, %c4_i32 : i32
    %c0_6 = arith.constant 0 : index
    %c0_7 = arith.constant 0 : index
    %9 = vector.load %arg8[%c0_6, %c0_7] : memref<8x128xf32, #tpu.memory_space<vmem>>, vector<8x128xf32>
    %cst = arith.constant 1.17549435E-38 : f32
    %c0_i32_8 = arith.constant 0 : i32
    %10 = arith.addi %8, %c0_i32_8 : i32
    %cst_9 = arith.constant dense<0xFF800000> : vector<128xf32>
    %11 = vector.multi_reduction <maximumf>, %9, %cst_9 [0] : vector<8x128xf32> to vector<128xf32>
    %12 = vector.shape_cast %11 : vector<128xf32> to vector<1x128xf32>
    %13 = vector.broadcast %12 : vector<1x128xf32> to vector<8x128xf32>
    %14 = arith.subf %9, %13 : vector<8x128xf32>
    %15 = math.exp %14 : vector<8x128xf32>
    %cst_10 = arith.constant dense<0.000000e+00> : vector<8x128xf32>
    %16 = tpu.matmul %0, %15, %cst_10 {dimension_numbers = #tpu.dot_dimension_numbers<[1], [0], [0], [1], [0, 0, 1, 1], [], []>} : vector<8x8xf32>, vector<8x128xf32>, vector<8x128xf32> -> vector<8x128xf32>
    %17 = arith.index_cast %c0_i32_8 : i32 to index
    %c0_11 = arith.constant 0 : index
    %c0_12 = arith.constant 0 : index
    %18 = vector.load %arg2[%17, %c0_11, %c0_12] : memref<4x8x128xf32, #tpu.memory_space<vmem>>, vector<1x8x128xf32>
    %19 = vector.shape_cast %18 : vector<1x8x128xf32> to vector<8x128xf32>
    %20 = vector.broadcast %cst : f32 to vector<8x128xf32>
    %21 = arith.maximumf %16, %20 : vector<8x128xf32>
    %22 = math.log %21 : vector<8x128xf32>
    %23 = vector.broadcast %12 : vector<1x128xf32> to vector<8x128xf32>
    %24 = arith.addf %23, %4 : vector<8x128xf32>
    %25 = arith.addf %22, %24 : vector<8x128xf32>
    %26 = arith.addf %25, %19 : vector<8x128xf32>
    %c1_i32 = arith.constant 1 : i32
    %27 = arith.cmpi sge, %10, %c1_i32 : i32
    %28 = vector.broadcast %10 : i32 to vector<1x128xi32>
    %29 = arith.cmpi slt, %28, %1 : vector<1x128xi32>
    %30 = vector.broadcast %27 : i1 to vector<1x128xi1>
    %31 = arith.andi %30, %29 : vector<1x128xi1>
    %32 = vector.shape_cast %31 : vector<1x128xi1> to vector<1x128xi1>
    %33 = vector.broadcast %32 : vector<1x128xi1> to vector<8x128xi1>
    %34 = arith.select %33, %26, %9 : vector<8x128xi1>, vector<8x128xf32>
    %c1_i32_13 = arith.constant 1 : i32
    %35 = arith.addi %8, %c1_i32_13 : i32
    %cst_14 = arith.constant dense<0xFF800000> : vector<128xf32>
    %36 = vector.multi_reduction <maximumf>, %34, %cst_14 [0] : vector<8x128xf32> to vector<128xf32>
    %37 = vector.shape_cast %36 : vector<128xf32> to vector<1x128xf32>
    %38 = vector.broadcast %37 : vector<1x128xf32> to vector<8x128xf32>
    %39 = arith.subf %34, %38 : vector<8x128xf32>
    %40 = math.exp %39 : vector<8x128xf32>
    %cst_15 = arith.constant dense<0.000000e+00> : vector<8x128xf32>
    %41 = tpu.matmul %0, %40, %cst_15 {dimension_numbers = #tpu.dot_dimension_numbers<[1], [0], [0], [1], [0, 0, 1, 1], [], []>} : vector<8x8xf32>, vector<8x128xf32>, vector<8x128xf32> -> vector<8x128xf32>
    %42 = arith.index_cast %c1_i32_13 : i32 to index
    %c0_16 = arith.constant 0 : index
    %c0_17 = arith.constant 0 : index
    %43 = vector.load %arg2[%42, %c0_16, %c0_17] : memref<4x8x128xf32, #tpu.memory_space<vmem>>, vector<1x8x128xf32>
    %44 = vector.shape_cast %43 : vector<1x8x128xf32> to vector<8x128xf32>
    %45 = vector.broadcast %cst : f32 to vector<8x128xf32>
    %46 = arith.maximumf %41, %45 : vector<8x128xf32>
    %47 = math.log %46 : vector<8x128xf32>
    %48 = vector.broadcast %37 : vector<1x128xf32> to vector<8x128xf32>
    %49 = arith.addf %48, %4 : vector<8x128xf32>
    %50 = arith.addf %47, %49 : vector<8x128xf32>
    %51 = arith.addf %50, %44 : vector<8x128xf32>
    %c1_i32_18 = arith.constant 1 : i32
    %52 = arith.cmpi sge, %35, %c1_i32_18 : i32
    %53 = vector.broadcast %35 : i32 to vector<1x128xi32>
    %54 = arith.cmpi slt, %53, %1 : vector<1x128xi32>
    %55 = vector.broadcast %52 : i1 to vector<1x128xi1>
    %56 = arith.andi %55, %54 : vector<1x128xi1>
    %57 = vector.shape_cast %56 : vector<1x128xi1> to vector<1x128xi1>
    %58 = vector.broadcast %57 : vector<1x128xi1> to vector<8x128xi1>
    %59 = arith.select %58, %51, %34 : vector<8x128xi1>, vector<8x128xf32>
    %c2_i32 = arith.constant 2 : i32
    %60 = arith.addi %8, %c2_i32 : i32
    %cst_19 = arith.constant dense<0xFF800000> : vector<128xf32>
    %61 = vector.multi_reduction <maximumf>, %59, %cst_19 [0] : vector<8x128xf32> to vector<128xf32>
    %62 = vector.shape_cast %61 : vector<128xf32> to vector<1x128xf32>
    %63 = vector.broadcast %62 : vector<1x128xf32> to vector<8x128xf32>
    %64 = arith.subf %59, %63 : vector<8x128xf32>
    %65 = math.exp %64 : vector<8x128xf32>
    %cst_20 = arith.constant dense<0.000000e+00> : vector<8x128xf32>
    %66 = tpu.matmul %0, %65, %cst_20 {dimension_numbers = #tpu.dot_dimension_numbers<[1], [0], [0], [1], [0, 0, 1, 1], [], []>} : vector<8x8xf32>, vector<8x128xf32>, vector<8x128xf32> -> vector<8x128xf32>
    %67 = arith.index_cast %c2_i32 : i32 to index
    %c0_21 = arith.constant 0 : index
    %c0_22 = arith.constant 0 : index
    %68 = vector.load %arg2[%67, %c0_21, %c0_22] : memref<4x8x128xf32, #tpu.memory_space<vmem>>, vector<1x8x128xf32>
    %69 = vector.shape_cast %68 : vector<1x8x128xf32> to vector<8x128xf32>
    %70 = vector.broadcast %cst : f32 to vector<8x128xf32>
    %71 = arith.maximumf %66, %70 : vector<8x128xf32>
    %72 = math.log %71 : vector<8x128xf32>
    %73 = vector.broadcast %62 : vector<1x128xf32> to vector<8x128xf32>
    %74 = arith.addf %73, %4 : vector<8x128xf32>
    %75 = arith.addf %72, %74 : vector<8x128xf32>
    %76 = arith.addf %75, %69 : vector<8x128xf32>
    %c1_i32_23 = arith.constant 1 : i32
    %77 = arith.cmpi sge, %60, %c1_i32_23 : i32
    %78 = vector.broadcast %60 : i32 to vector<1x128xi32>
    %79 = arith.cmpi slt, %78, %1 : vector<1x128xi32>
    %80 = vector.broadcast %77 : i1 to vector<1x128xi1>
    %81 = arith.andi %80, %79 : vector<1x128xi1>
    %82 = vector.shape_cast %81 : vector<1x128xi1> to vector<1x128xi1>
    %83 = vector.broadcast %82 : vector<1x128xi1> to vector<8x128xi1>
    %84 = arith.select %83, %76, %59 : vector<8x128xi1>, vector<8x128xf32>
    %c3_i32 = arith.constant 3 : i32
    %85 = arith.addi %8, %c3_i32 : i32
    %cst_24 = arith.constant dense<0xFF800000> : vector<128xf32>
    %86 = vector.multi_reduction <maximumf>, %84, %cst_24 [0] : vector<8x128xf32> to vector<128xf32>
    %87 = vector.shape_cast %86 : vector<128xf32> to vector<1x128xf32>
    %88 = vector.broadcast %87 : vector<1x128xf32> to vector<8x128xf32>
    %89 = arith.subf %84, %88 : vector<8x128xf32>
    %90 = math.exp %89 : vector<8x128xf32>
    %cst_25 = arith.constant dense<0.000000e+00> : vector<8x128xf32>
    %91 = tpu.matmul %0, %90, %cst_25 {dimension_numbers = #tpu.dot_dimension_numbers<[1], [0], [0], [1], [0, 0, 1, 1], [], []>} : vector<8x8xf32>, vector<8x128xf32>, vector<8x128xf32> -> vector<8x128xf32>
    %92 = arith.index_cast %c3_i32 : i32 to index
    %c0_26 = arith.constant 0 : index
    %c0_27 = arith.constant 0 : index
    %93 = vector.load %arg2[%92, %c0_26, %c0_27] : memref<4x8x128xf32, #tpu.memory_space<vmem>>, vector<1x8x128xf32>
    %94 = vector.shape_cast %93 : vector<1x8x128xf32> to vector<8x128xf32>
    %95 = vector.broadcast %cst : f32 to vector<8x128xf32>
    %96 = arith.maximumf %91, %95 : vector<8x128xf32>
    %97 = math.log %96 : vector<8x128xf32>
    %98 = vector.broadcast %87 : vector<1x128xf32> to vector<8x128xf32>
    %99 = arith.addf %98, %4 : vector<8x128xf32>
    %100 = arith.addf %97, %99 : vector<8x128xf32>
    %101 = arith.addf %100, %94 : vector<8x128xf32>
    %c1_i32_28 = arith.constant 1 : i32
    %102 = arith.cmpi sge, %85, %c1_i32_28 : i32
    %103 = vector.broadcast %85 : i32 to vector<1x128xi32>
    %104 = arith.cmpi slt, %103, %1 : vector<1x128xi32>
    %105 = vector.broadcast %102 : i1 to vector<1x128xi1>
    %106 = arith.andi %105, %104 : vector<1x128xi1>
    %107 = vector.shape_cast %106 : vector<1x128xi1> to vector<1x128xi1>
    %108 = vector.broadcast %107 : vector<1x128xi1> to vector<8x128xi1>
    %109 = arith.select %108, %101, %84 : vector<8x128xi1>, vector<8x128xf32>
    %c4_i32_29 = arith.constant 4 : i32
    %c0_30 = arith.constant 0 : index
    %c0_31 = arith.constant 0 : index
    %110 = vector.load %arg8[%c0_30, %c0_31] : memref<8x128xf32, #tpu.memory_space<vmem>>, vector<8x128xf32>
    tpu.vector_store %arg8[%c0_30, %c0_31], %109 {strides = array<i32>} : memref<8x128xf32, #tpu.memory_space<vmem>>, vector<8x128xf32>,
    %c1_i32_32 = arith.constant 1 : i32
    %111 = arith.cmpi eq, %arg1, %c1_i32_32 : i32
    %112 = arith.extui %111 : i1 to i32
    %c0_i32_33 = arith.constant 0 : i32
    %113 = arith.cmpi ne, %112, %c0_i32_33 : i32
    scf.if %113 {
      %c0_34 = arith.constant 0 : index
      %c0_35 = arith.constant 0 : index
      %114 = vector.load %arg6[%c0_34, %c0_35] : memref<8x1xf32, #tpu.memory_space<vmem>>, vector<8x1xf32>
      %115 = vector.broadcast %114 : vector<8x1xf32> to vector<8x128xf32>
      %116 = arith.addf %109, %115 : vector<8x128xf32>
      %cst_36 = arith.constant dense<0xFF800000> : vector<128xf32>
      %117 = vector.multi_reduction <maximumf>, %116, %cst_36 [0] : vector<8x128xf32> to vector<128xf32>
      %118 = vector.shape_cast %117 : vector<128xf32> to vector<1x128xf32>
      %119 = vector.broadcast %118 : vector<1x128xf32> to vector<8x128xf32>
      %120 = arith.subf %116, %119 : vector<8x128xf32>
      %121 = math.exp %120 : vector<8x128xf32>
      %cst_37 = arith.constant dense<0.000000e+00> : vector<128xf32>
      %122 = vector.multi_reduction <add>, %121, %cst_37 [0] : vector<8x128xf32> to vector<128xf32>
      %123 = vector.shape_cast %122 : vector<128xf32> to vector<1x128xf32>
      %124 = math.log %123 : vector<1x128xf32>
      %125 = arith.addf %124, %118 : vector<1x128xf32>
      %c0_38 = arith.constant 0 : index
      %c0_39 = arith.constant 0 : index
      %126 = vector.load %arg7[%c0_38, %c0_39] : memref<1x128xf32, #tpu.memory_space<vmem>>, vector<1x128xf32>
      tpu.vector_store %arg7[%c0_38, %c0_39], %125 {strides = array<i32>} : memref<1x128xf32, #tpu.memory_space<vmem>>, vector<1x128xf32>,
    } else {
    }
    return
  }
  func.func @transform_0(%arg0: i32, %arg1: i32) -> (i32, i32, i32) {
    %c0_i32 = arith.constant 0 : i32
    %c0_i32_0 = arith.constant 0 : i32
    return %arg1, %c0_i32, %arg0 : i32, i32, i32
  }
  func.func @transform_1(%arg0: i32, %arg1: i32) -> (i32, i32) {
    %c0_i32 = arith.constant 0 : i32
    %c0_i32_0 = arith.constant 0 : i32
    return %c0_i32, %arg0 : i32, i32
  }
  func.func @transform_2(%arg0: i32, %arg1: i32) -> (i32, i32) {
    %c0_i32 = arith.constant 0 : i32
    %c0_i32_0 = arith.constant 0 : i32
    %c0_i32_1 = arith.constant 0 : i32
    return %c0_i32, %c0_i32_0 : i32, i32
  }
  func.func @transform_3(%arg0: i32, %arg1: i32) -> (i32, i32) {
    %c0_i32 = arith.constant 0 : i32
    %c0_i32_0 = arith.constant 0 : i32
    %c0_i32_1 = arith.constant 0 : i32
    return %c0_i32, %c0_i32_0 : i32, i32
  }
  func.func @transform_4(%arg0: i32, %arg1: i32) -> (i32, i32) {
    %c0_i32 = arith.constant 0 : i32
    %c0_i32_0 = arith.constant 0 : i32
    %c0_i32_1 = arith.constant 0 : i32
    return %c0_i32, %c0_i32_0 : i32, i32
  }
  func.func @transform_5(%arg0: i32, %arg1: i32) -> (i32, i32) {
    %c0_i32 = arith.constant 0 : i32
    %c0_i32_0 = arith.constant 0 : i32
    return %c0_i32, %arg0 : i32, i32
  }
}

</mosaic_0001>

<bundles_post_ra>
// kernel: crf_neg_log_likelihood.1
= control target key start
LH: loop header
LB: loop body
LE: loop exit
PB: predicated region body
PF: predicated region fallthrough
CT: control target
= control target key end

     0   :  { %s941_s18 = smov 0   ;;  %s943_s19 = smov 0   ;;  %s1044_s0 = inlined_call_operand.vmem [shape: f32[8,8,128], index: 0, kind: input, shape index: {}]   ;;  %s1045_s1 = inlined_call_operand.vmem [shape: s32[1,128], index: 1, kind: input, shape index: {}]   ;;  %s1046_s2 = inlined_call_operand.vmem [shape: f32[8,8], index: 2, kind: input, shape index: {}]   ;;  %s1047_s3 = inlined_call_operand.vmem [shape: f32[8,1], index: 3, kind: input, shape index: {}]   ;;  %s1048_s4 = inlined_call_operand.vmem [shape: f32[8,1], index: 4, kind: input, shape index: {}]   ;;  %s1049_s5 = inlined_call_operand.vmem [shape: f32[1,128], index: 5, kind: output, shape index: {}]  }
   0x1   :  { %s945_s20 = smov 0  }
   0x2 LB: > { %s24_s21 = sadd.s32 1, %s901_s19  ;;  %p789_p0 = scmp.ge.s32.totalorder %s905_s20, 1  ;;  %s905_s20 = sphi %s945_s20, %s15_s20   ;;  %s901_s19 = sphi %s943_s19, %s1051_s19   ;;  %s897_s18 = sphi %s941_s18, %s1050_s18  }
   0x3   : > { %p25_p1 = scmp.ge.s32.totalorder %s24_s21, 2  ;;  %p213_p2 = scmp.lt.s32.totalorder %s905_s20, 3 }
   0x5   : > { %s1053_s21 = smov (%p25_p1, %s24_s21), 0  ;;  %p214_p3 = pnand %p789_p0, %p213_p2 }
   0x6   : > { %s965_s24 = sshll.u32 (!%p214_p3), %s897_s18, 2  ;;  %p792_p5 = scmp.ne.s32.totalorder (!%p214_p3), %s897_s18, 0 }
   0x7   : > { %217 = sbr.rel (%p214_p3) target bundleno = 1325 (0x52d), region = 40  ;;  %p246_p4 = scmp.lt.s32.totalorder (!%p214_p3), %s965_s24, 7 }
   0xc   : > { %v262_v0 = vld [vmem:[%s1047_s3] sm:$0xff]  ;;  %v907_v3 = vmov 0   ;;  %s247_s29 = scalar_select %p246_p4, %s965_s24, 7 }
   0xd   : > { %v970_v1 = vld [vmem:[%s1046_s2] sm:$0xff]  ;;  %861 = vset.pattern.permute.xlu0 %v907_v3 }
   0xe   : > { %v975_v2 = vld [vmem:[%s1045_s1] sm:$0x1]  ;;  %265 = vperm.xlu0 %861, %v262_v0   ;;  %s791_s30 = sshll.u32 %s247_s29, 3 }
   0xf   : > { %s983_s8 = scalar_lea.vmem %s1044_s0, %s791_s30 }
  0x85   : > { %271 = sbr.rel (%p792_p5) target bundleno = 140 (0x8c), region = 44 }
  0x89   : > { %v985_v4 = vpop.permute.xlu0 %265 }
  0x8a   : > { %v272_v5 = vld [vmem:[%s983_s8] sm:$0xff] }
  0x8b   : > { %273 = vst [vmem:[#allocation2] sm:$0xff] %v272_v5 }
  0x8c PF: > { %v908_v7 = vmov 0.0   ;;  %vm909_vm0 = vmmov 0   ;;  %vm285_vm1 = vcmask 64512   ;;  %p366_p6 = scmp.ge.s32.totalorder %s965_s24, 1  ;;  %v367_v20 = vstv %s965_s24  ;;  %v359_v30 = vld [vmem:[%s983_s8] sm:$0xff]  ;;  %s380_s10 = sadd.s32 1, %s965_s24 }
  0x8d   : > { %813 = vmatprep.subr.mxu0 %v908_v7  ;;  %815 = vmatprep.mubr.msk.f32.mxu0 %vm909_vm0, %v908_v7  ;;  %v374_v22 = vlaneseq  ;;  %vm368_vm2 = vcmp.lt.s32.totalorder %v367_v20, %v975_v2  ;;  %p468_p7 = scmp.ge.s32.totalorder %s380_s10, 1  ;;  %v469_v46 = vstv %s380_s10  ;;  %v796_v53 = vld [vmem:[%s983_s8 + $0x8] sm:$0xff]  ;;  %s482_s12 = sadd.s32 2, %s965_s24 }
  0x8e   : > { %818 = vmatprep.subr.mxu1 %v908_v7  ;;  %820 = vmatprep.mubr.msk.f32.mxu1 %vm909_vm0, %v908_v7  ;;  %s369_s9 = scalar_select %p366_p6, 1, 0  ;;  %vm470_vm6 = vcmp.lt.s32.totalorder %v469_v46, %v975_v2 }
  0x8f   : > { %v375_v23 = vshrl.u32 %v374_v22, 7  ;;  %s471_s11 = scalar_select %p468_p7, 1, 0 }
  0x90   : > { %v370_v21 = vstv %s369_s9  ;;  %p570_p8 = scmp.ge.s32.totalorder %s482_s12, 1  ;;  %s584_s14 = sadd.s32 3, %s965_s24 }
  0x91   : > { %vm371_vm3 = vcmp.eq.s32.totalorder %v370_v21, 1  ;;  %v997_v24 = vsub.s32 0, %v375_v23  ;;  %v472_v47 = vstv %s471_s11  ;;  %p672_p9 = scmp.ge.s32.totalorder %s584_s14, 1  ;;  %p801_p10 = scmp.ne.s32.totalorder %s897_s18, 1 }
  0x92   : > { %v275_v6 = vld [vmem:[#allocation2] sm:$0xff]  ;;  %vm372_vm4 = vmand %vm371_vm3, %vm368_vm2  ;;  %vm473_vm7 = vcmp.eq.s32.totalorder %v472_v47, 1  ;;  %s573_s13 = scalar_select %p570_p8, 1, 0 }
  0x93   : > { %v276_v8 = vrot.slane %v275_v6, 4  ;;  %v373_v25 = vsel %vm372_vm4, 1, %v907_v3  ;;  %vm474_vm8 = vmand %vm473_vm7, %vm470_vm6  ;;  %s675_s15 = scalar_select %p672_p9, 1, 0 }
  0x94   : > { %v377_v28 = vrot.slane %v373_v25, %v997_v24  ;;  %v475_v48 = vsel %vm474_vm8, 1, %v907_v3 }
  0x95   : > { %v277_v9 = vmax.f32 %v275_v6, %v276_v8  ;;  %v479_v50 = vrot.slane %v475_v48, %v997_v24 }
  0x96   : > { %vm378_vm5 = vcmp.eq.s32.totalorder %v377_v28, 1 }
  0x97   : > { %v278_v10 = vrot.slane %v277_v9, 2  ;;  %vm480_vm9 = vcmp.eq.s32.totalorder %v479_v50, 1 }
  0x99   : > { %v279_v11 = vmax.f32 %v277_v9, %v278_v10  ;;  %v571_v9 = vstv %s482_s12  ;;  %v574_v10 = vstv %s573_s13 }
  0x9a   : > { %vm572_vm10 = vcmp.lt.s32.totalorder %v571_v9, %v975_v2  ;;  %vm575_vm11 = vcmp.eq.s32.totalorder %v574_v10, 1 }
  0x9b   : > { %v280_v12 = vrot.slane %v279_v11, 1  ;;  %vm576_vm12 = vmand %vm575_vm11, %vm572_vm10 }
  0x9d   : > { %v281_v13 = vmax.f32 %v279_v11, %v280_v12  ;;  %v577_v11 = vsel %vm576_vm12, 1, %v907_v3 }
  0x9f   : > { %v282_v14 = vsub.f32 %v275_v6, %v281_v13  ;;  %v363_v26 = vadd.f32 %v281_v13, %v985_v4  ;;  %v581_v13 = vrot.slane %v577_v11, %v997_v24 }
  0xa1   : > { %v283_v15 = vmul.f32 1.442695, %v282_v14  ;;  %vm582_vm13 = vcmp.eq.s32.totalorder %v581_v13, 1 }
  0xa3   : > { %862 = vpow2.f32 %v283_v15 }
  0xb0   : > { %v863_v16 = vpop.eup %862 }
  0xb1   : > { %814 = vmatpush3.msra.mxu0 %v863_v16  ;;  %v798_v16 = vld [vmem:[%s983_s8 + $0x10] sm:$0xff] }
  0xb2   : > { %816 = vmatmul.mubr.msk.f32.vlgmr.msra.gmra.mxu0 %vm285_vm1, %v970_v1  ;;  %823 = vmatprep.subr.mxu0 %v908_v7 }
  0xb3   : > { %825 = vmatprep.mubr.msk.f32.mxu0 %vm909_vm0, %v908_v7 }
 0x172   : > { %v355_v17 = vpop.f32.mrf.mxu0 }
 0x173   : > { %v360_v18 = vmax.f32 %v355_v17, 1.1754944e-38 }
 0x174   : > { %v817_v19 = vpop.f32.mrf.mxu0 }
 0x175   : > { %864 = vlog2.f32 %v360_v18 }
 0x182   : > { %v865_v27 = vpop.eup %864 }
 0x183   : > { %v362_v29 = vmul.f32 0.6931472, %v865_v27 }
 0x185   : > { %v364_v31 = vadd.f32 %v363_v26, %v362_v29 }
 0x187   : > { %v365_v32 = vadd.f32 %v364_v31, %v359_v30 }
 0x189   : > { %v379_v33 = vsel %vm378_vm5, %v365_v32, %v275_v6 }
 0x18a   : > { %v381_v34 = vrot.slane %v379_v33, 4 }
 0x18c   : > { %v382_v35 = vmax.f32 %v379_v33, %v381_v34  ;;  %v676_v34 = vstv %s675_s15 }
 0x18d   : > { %vm677_vm15 = vcmp.eq.s32.totalorder %v676_v34, 1 }
 0x18e   : > { %v383_v36 = vrot.slane %v382_v35, 2 }
 0x190   : > { %v384_v37 = vmax.f32 %v382_v35, %v383_v36 }
 0x192   : > { %v385_v38 = vrot.slane %v384_v37, 1 }
 0x194   : > { %v386_v39 = vmax.f32 %v384_v37, %v385_v38 }
 0x196   : > { %v387_v40 = vsub.f32 %v379_v33, %v386_v39  ;;  %v465_v52 = vadd.f32 %v386_v39, %v985_v4  ;;  %v800_v39 = vld [vmem:[%s983_s8 + $0x18] sm:$0xff] }
 0x198   : > { %v388_v41 = vmul.f32 1.442695, %v387_v40 }
 0x19a   : > { %866 = vpow2.f32 %v388_v41 }
 0x1a7   : > { %v867_v42 = vpop.eup %866 }
 0x1a8   : > { %819 = vmatpush3.msra.mxu1 %v867_v42 }
 0x1a9   : > { %821 = vmatmul.mubr.msk.f32.vlgmr.msra.gmra.mxu1 %vm285_vm1, %v970_v1  ;;  %828 = vmatprep.subr.mxu1 %v908_v7 }
 0x1aa   : > { %830 = vmatprep.mubr.msk.f32.mxu1 %vm909_vm0, %v908_v7 }
 0x269   : > { %v456_v43 = vpop.f32.mrf.mxu1 }
 0x26a   : > { %v462_v44 = vmax.f32 %v456_v43, 1.1754944e-38 }
 0x26b   : > { %v822_v45 = vpop.f32.mrf.mxu1 }
 0x26c   : > { %868 = vlog2.f32 %v462_v44 }
 0x279   : > { %v869_v49 = vpop.eup %868 }
 0x27a   : > { %v464_v51 = vmul.f32 0.6931472, %v869_v49 }
 0x27c   : > { %v466_v54 = vadd.f32 %v465_v52, %v464_v51 }
 0x27e   : > { %v467_v55 = vadd.f32 %v796_v53, %v466_v54 }
 0x280   : > { %v481_v56 = vsel %vm480_vm9, %v467_v55, %v379_v33  ;;  %v673_v33 = vstv %s584_s14 }
 0x281   : > { %v483_v57 = vrot.slane %v481_v56, 4  ;;  %vm674_vm14 = vcmp.lt.s32.totalorder %v673_v33, %v975_v2 }
 0x282   : > { %vm678_vm0 = vmand %vm677_vm15, %vm674_vm14 }
 0x283   : > { %v484_v58 = vmax.f32 %v481_v56, %v483_v57  ;;  %v679_v35 = vsel %vm678_vm0, 1, %v907_v3 }
 0x284   : > { %v683_v37 = vrot.slane %v679_v35, %v997_v24 }
 0x285   : > { %v485_v59 = vrot.slane %v484_v58, 2 }
 0x287   : > { %v486_v60 = vmax.f32 %v484_v58, %v485_v59 }
 0x289   : > { %v487_v61 = vrot.slane %v486_v60, 1 }
 0x28b   : > { %v488_v62 = vmax.f32 %v486_v60, %v487_v61 }
 0x28d   : > { %v489_v63 = vsub.f32 %v481_v56, %v488_v62  ;;  %v567_v15 = vadd.f32 %v488_v62, %v985_v4 }
 0x28f   : > { %v490_v0 = vmul.f32 1.442695, %v489_v63 }
 0x291   : > { %870 = vpow2.f32 %v490_v0 }
 0x29e   : > { %v871_v5 = vpop.eup %870 }
 0x29f   : > { %824 = vmatpush3.msra.mxu0 %v871_v5 }
 0x2a0   : > { %826 = vmatmul.mubr.msk.f32.vlgmr.msra.gmra.mxu0 %vm285_vm1, %v970_v1 }
 0x360   : > { %v558_v6 = vpop.f32.mrf.mxu0 }
 0x361   : > { %v564_v7 = vmax.f32 %v558_v6, 1.1754944e-38 }
 0x362   : > { %v827_v8 = vpop.f32.mrf.mxu0 }
 0x363   : > { %872 = vlog2.f32 %v564_v7 }
 0x370   : > { %v873_v12 = vpop.eup %872 }
 0x371   : > { %v566_v14 = vmul.f32 0.6931472, %v873_v12 }
 0x373   : > { %v568_v17 = vadd.f32 %v567_v15, %v566_v14 }
 0x375   : > { %v569_v18 = vadd.f32 %v798_v16, %v568_v17 }
 0x377   : > { %v583_v19 = vsel %vm582_vm13, %v569_v18, %v481_v56 }
 0x378   : > { %v585_v20 = vrot.slane %v583_v19, 4 }
 0x37a   : > { %v586_v21 = vmax.f32 %v583_v19, %v585_v20 }
 0x37c   : > { %v587_v22 = vrot.slane %v586_v21, 2 }
 0x37e   : > { %v588_v23 = vmax.f32 %v586_v21, %v587_v22 }
 0x380   : > { %v589_v25 = vrot.slane %v588_v23, 1 }
 0x382   : > { %v590_v26 = vmax.f32 %v588_v23, %v589_v25 }
 0x384   : > { %v591_v27 = vsub.f32 %v583_v19, %v590_v26  ;;  %v669_v38 = vadd.f32 %v590_v26, %v985_v4 }
 0x386   : > { %v592_v28 = vmul.f32 1.442695, %v591_v27 }
 0x388   : > { %874 = vpow2.f32 %v592_v28 }
 0x395   : > { %v875_v29 = vpop.eup %874 }
 0x396   : > { %829 = vmatpush3.msra.mxu1 %v875_v29 }
 0x397   : > { %831 = vmatmul.mubr.msk.f32.vlgmr.msra.gmra.mxu1 %vm285_vm1, %v970_v1  ;;  %vm684_vm1 = vcmp.eq.s32.totalorder %v683_v37, 1 }
 0x457   : > { %v660_v30 = vpop.f32.mrf.mxu1 }
 0x458   : > { %v666_v31 = vmax.f32 %v660_v30, 1.1754944e-38 }
 0x459   : > { %v832_v32 = vpop.f32.mrf.mxu1 }
 0x45a   : > { %876 = vlog2.f32 %v666_v31 }
 0x467   : > { %v877_v36 = vpop.eup %876 }
 0x468   : > { %v668_v1 = vmul.f32 0.6931472, %v877_v36 }
 0x46a   : > { %v670_v40 = vadd.f32 %v669_v38, %v668_v1 }
 0x46b   : > { %690 = sbr.rel (%p801_p10) target bundleno = 1325 (0x52d), region = 48 }
 0x46c   : > { %v671_v41 = vadd.f32 %v800_v39, %v670_v40 }
 0x46e   : > { %v685_v42 = vsel %vm684_vm1, %v671_v41, %v583_v19 }
 0x46f   : > { %686 = vst [vmem:[#allocation2] sm:$0xff] %v685_v42 }
 0x470   : > { %v691_v2 = vld [vmem:[%s1048_s4] sm:$0xff]  ;;  %v910_v3 = vmov 0  }
 0x471   : > { %878 = vset.pattern.permute.xlu0 %v910_v3 }
 0x472   : > { %694 = vperm.xlu0 %878, %v691_v2  }
 0x4ed   : > { %v695_v24 = vpop.permute.xlu0 %694 }
 0x4ee   : > { %v697_v43 = vadd.f32 %v695_v24, %v685_v42 }
 0x4f0   : > { %v698_v44 = vrot.slane %v697_v43, 4 }
 0x4f2   : > { %v699_v4 = vmax.f32 %v697_v43, %v698_v44 }
 0x4f4   : > { %v700_v45 = vrot.slane %v699_v4, 2 }
 0x4f6   : > { %v701_v46 = vmax.f32 %v699_v4, %v700_v45 }
 0x4f8   : > { %v702_v47 = vrot.slane %v701_v46, 1 }
 0x4fa   : > { %v703_v48 = vmax.f32 %v701_v46, %v702_v47 }
 0x4fc   : > { %v704_v49 = vsub.f32 %v697_v43, %v703_v48 }
 0x4fe   : > { %v705_v50 = vmul.f32 1.442695, %v704_v49 }
 0x500   : > { %879 = vpow2.f32 %v705_v50 }
 0x50d   : > { %v880_v51 = vpop.eup %879 }
 0x50e   : > { %v707_v52 = vrot.slane %v880_v51, 4 }
 0x510   : > { %v708_v53 = vadd.f32 %v880_v51, %v707_v52 }
 0x512   : > { %v709_v54 = vrot.slane %v708_v53, 2 }
 0x514   : > { %v710_v55 = vadd.f32 %v709_v54, %v708_v53 }
 0x516   : > { %v711_v56 = vrot.slane %v710_v55, 1 }
 0x518   : > { %v712_v57 = vadd.f32 %v711_v56, %v710_v55 }
 0x51a   : > { %881 = vlog2.f32 %v712_v57 }
 0x527   : > { %v882_v58 = vpop.eup %881 }
 0x528   : > { %v714_v59 = vmul.f32 0.6931472, %v882_v58 }
 0x52a   : > { %v715_v60 = vadd.f32 %v714_v59, %v703_v48 }
 0x52c   : > { %716 = vst [vmem:[%s1049_s5] sm:$0x1] %v715_v60 }
 0x52d PF: > { %s15_s20 = sadd.s32 1, %s905_s20   ;;  %s1050_s18 = smov %s901_s19 }
 0x52e   : > { %p12_p11 = scmp.ge.s32.totalorder %s15_s20, 4   ;;  %s1051_s19 = smov %s1053_s21 }
 0x530   :  { %14 = sbr.rel (!%p12_p11) target bundleno = 2 (0x2), region = 84 }

</bundles_post_ra>
